<compile_context>
chip_gen: v7x
topology: tpu7x:2x2x1
jax: 0.10.0
libtpu: 0.0.40
codegen_flags: <defaults>
</compile_context>

<pallas_src>
import jax
import jax.numpy as jnp
from jax import lax
from jax.experimental import pallas as pl
from jax.experimental.pallas import tpu as pltpu


# ---------------------------------------------------------------------------
# Fused kernel: encode + predict + Gram + SPD solve + ridge apply + adjust
# ---------------------------------------------------------------------------
def _resus_rr_kernel(sxa_ref, sxb_ref, qxa_ref, qxb_ref, sy_ref,
                     we_ref, be_ref, wp_ref,
                     bp_ref, lam_ref, scale_ref, bias_ref,
                     po_ref):
    n_s, F = sxa_ref.shape
    num_samples = sy_ref.shape[1]          # == n_s (static)

    sxa = sxa_ref[...]
    sxb = sxb_ref[...]
    qxa = qxa_ref[...]
    qxb = qxb_ref[...]
    we_a = we_ref[:F, :]                   # static, aligned slices
    we_b = we_ref[F:, :]
    be = be_ref[...]
    wp_a = wp_ref[:, :F]
    wp_b = wp_ref[:, F:]
    bp = bp_ref[0, 0]

    # --- synthetic encoder hiddens (split contraction, no concat needed) ----
    h_s = (jnp.dot(sxa, we_a, preferred_element_type=jnp.float32)
           + jnp.dot(sxb, we_b, preferred_element_type=jnp.float32) + be)   # (n_s, D)
    h_q = (jnp.dot(qxa, we_a, preferred_element_type=jnp.float32)
           + jnp.dot(qxb, we_b, preferred_element_type=jnp.float32) + be)   # (n_q, D)

    # --- synthetic predictor logits, lane-dense rows (A @ B^T MXU path) -----
    dn = (((1,), (1,)), ((), ()))
    p_s = (lax.dot_general(wp_a, sxa, dn, preferred_element_type=jnp.float32)
           + lax.dot_general(wp_b, sxb, dn, preferred_element_type=jnp.float32)
           + bp)                                                             # (1, n_s)
    p_q = (lax.dot_general(wp_a, qxa, dn, preferred_element_type=jnp.float32)
           + lax.dot_general(wp_b, qxb, dn, preferred_element_type=jnp.float32)
           + bp)                                                             # (1, n_q)

    # --- A = Hs Hs^T + 1 + |lambda| I  (Gram of X' = [Hs | 1]) --------------
    lam = jnp.abs(lam_ref[0])
    g = lax.dot_general(h_s, h_s, dn, preferred_element_type=jnp.float32) + 1.0
    row_ids = lax.broadcasted_iota(jnp.int32, (n_s, n_s), 0)
    col_ids = lax.broadcasted_iota(jnp.int32, (n_s, n_s), 1)
    g = jnp.where(row_ids == col_ids, g + lam, g)

    # --- residual row: r = y - sigmoid(p_s) ----------------------------------
    r = sy_ref[...] - jax.nn.sigmoid(p_s)                                    # (1, n_s)

    # --- Gauss-Jordan column elimination on augmented block [A ; r] ---------
    # After n_s steps the bottom row is u = r @ A^{-1} (A symmetric SPD).
    aug = jnp.concatenate([g, r], axis=0)                                    # (n_s+1, n_s)
    aug_cols = lax.broadcasted_iota(jnp.int32, (n_s + 1, n_s), 1)
    u_cols = lax.broadcasted_iota(jnp.int32, (1, n_s), 1)
    u = r
    for k in range(n_s):
        piv = aug[k:k + 1, k:k + 1]                    # (1, 1)
        inv0 = pl.reciprocal(piv, approx=True)         # EUP slot
        inv_piv = inv0 * (2.0 - piv * inv0)            # one Newton step
        row_k = aug[k:k + 1, :]                        # (1, n_s)
        if k < n_s - 1:
            col = aug[:, k:k + 1] * inv_piv            # (n_s+1, 1)
            aug = aug - col * row_k                    # rank-1 update
            aug = jnp.where(aug_cols == k, col, aug)   # restore column k
        else:
            # last step: only the residual row stays live
            rk = aug[n_s:, k:k + 1] * inv_piv          # (1, 1)
            u = aug[n_s:, :] - rk * row_k
            u = jnp.where(u_cols == k, rk, u)          # (1, n_s)

    # --- ridge weights applied to the query set -----------------------------
    db = jnp.sum(u, axis=1, keepdims=True)                                   # (1, 1)
    dw = jnp.dot(u, h_s, preferred_element_type=jnp.float32)                 # (1, D)
    out = lax.dot_general(dw, h_q, dn, preferred_element_type=jnp.float32) + db  # (1, n_q)

    # --- AdjustLayer (in-kernel gather) + query predictor logits ------------
    scale = jnp.abs(scale_ref[num_samples - 1, 0])
    bias = bias_ref[num_samples - 1, 0]
    pred = out * scale + bias + p_q                                          # (1, n_q)

    po_ref[0:1, :] = pred
    po_ref[1:2, :] = out


# ---------------------------------------------------------------------------
# Wrapper: pure pass-through, no XLA ops before the kernel
# ---------------------------------------------------------------------------
@jax.jit
def resus_rr_forward(params, support_xa, support_xb, support_y,
                     query_xa, query_xb):
    n_q = query_xa.shape[0]
    vmem = pl.BlockSpec(memory_space=pltpu.MemorySpace.VMEM)
    smem = pl.BlockSpec(memory_space=pltpu.MemorySpace.SMEM)

    po = pl.pallas_call(
        _resus_rr_kernel,
        out_shape=jax.ShapeDtypeStruct((2, n_q), jnp.float32),
        in_specs=[vmem, vmem, vmem, vmem, vmem, vmem, vmem, vmem,
                  smem, smem, smem, smem],
        out_specs=vmem,
    )(support_xa, support_xb, query_xa, query_xb, support_y,
      params['we'], params['be'], params['wp'],
      params['bp'], params['lambda'], params['scale'], params['bias'])

    # torch forward returns 1-D (prediction, out) of length n_query
    return po[0], po[1]


# ---------------------------------------------------------------------------
# Pure-JAX reference (mirrors the torch math) for a sanity check
# ---------------------------------------------------------------------------
def _reference_forward(params, support_xa, support_xb, support_y,
                       query_xa, query_xb):
    num_samples = support_y.shape[1]
    x_s = jnp.concatenate([support_xa, support_xb], axis=1)
    x_q = jnp.concatenate([query_xa, query_xb], axis=1)
    h_s = x_s @ params['we'] + params['be']
    h_q = x_q @ params['we'] + params['be']
    p_s = x_s @ params['wp'].T + params['bp']       # (n_s, 1)
    p_q = x_q @ params['wp'].T + params['bp']       # (n_q, 1)
    ones = jnp.ones((h_s.shape[0], 1), jnp.float32)
    xp = jnp.concatenate([h_s, ones], axis=1)       # X'
    lam = jnp.abs(params['lambda'][0])
    a = xp @ xp.T + lam * jnp.eye(h_s.shape[0], dtype=jnp.float32)
    r = support_y.reshape(-1, 1) - jax.nn.sigmoid(p_s)
    w = xp.T @ jnp.linalg.inv(a) @ r                # woodbury form
    dw, db = w[:-1], w[-1]
    out = (h_q @ dw)[:, 0] + db[0]
    pred = (out * jnp.abs(params['scale'][num_samples - 1, 0])
            + params['bias'][num_samples - 1, 0] + p_q[:, 0])
    return pred, out


if __name__ == "__main__":
    key = jax.random.PRNGKey(0)
    n_support, n_query = 8, 8
    num_fields, hidden = 8, 32
    COLD_USER_THRESHOLD = 8                  # num_samples (=8) must be <= this

    ks = jax.random.split(key, 9)
    support_xa = jax.random.normal(ks[0], (n_support, num_fields), jnp.float32)
    support_xb = jax.random.normal(ks[1], (n_support, num_fields), jnp.float32)
    query_xa = jax.random.normal(ks[2], (n_query, num_fields), jnp.float32)
    query_xb = jax.random.normal(ks[3], (n_query, num_fields), jnp.float32)
    support_y = (jax.random.uniform(ks[4], (1, n_support)) > 0.5).astype(jnp.float32)

    params = {
        # synthetic encoder / predictor weights (injected modules in the spec)
        'we': 0.1 * jax.random.normal(ks[5], (2 * num_fields, hidden), jnp.float32),
        'be': 0.01 * jax.random.normal(ks[6], (1, hidden), jnp.float32),
        'wp': 0.1 * jax.random.normal(ks[7], (1, 2 * num_fields), jnp.float32),
        'bp': 0.01 * jax.random.normal(ks[8], (1, 1), jnp.float32),
        # LambdaLayer(init_lambda=1)
        'lambda': jnp.array([1.0], jnp.float32),
        # AdjustLayer(init_scale=6, init_bias=0, num_adjust=COLD_USER_THRESHOLD)
        'scale': jnp.full((COLD_USER_THRESHOLD, 1), 6.0, jnp.float32),
        'bias': jnp.zeros((COLD_USER_THRESHOLD, 1), jnp.float32),
    }

    prediction, out = resus_rr_forward(params, support_xa, support_xb,
                                       support_y, query_xa, query_xb)
    jax.block_until_ready((prediction, out))

    # correctness check against the plain-JAX / torch-equivalent math
    pred_ref, out_ref_val = _reference_forward(params, support_xa, support_xb,
                                               support_y, query_xa, query_xb)
    max_err = max(float(jnp.max(jnp.abs(prediction - pred_ref))),
                  float(jnp.max(jnp.abs(out - out_ref_val))))
    assert max_err < 1e-3, f"mismatch vs reference: {max_err}"

    print("KERNEL_OK")
</pallas_src>

<mosaic_0001>
module attributes {stable_mosaic.version = 11 : i64} {
  func.func @_resus_rr_kernel(%arg0: memref<8x8xf32, #tpu.memory_space<vmem>>, %arg1: memref<8x8xf32, #tpu.memory_space<vmem>>, %arg2: memref<8x8xf32, #tpu.memory_space<vmem>>, %arg3: memref<8x8xf32, #tpu.memory_space<vmem>>, %arg4: memref<1x8xf32, #tpu.memory_space<vmem>>, %arg5: memref<16x32xf32, #tpu.memory_space<vmem>>, %arg6: memref<1x32xf32, #tpu.memory_space<vmem>>, %arg7: memref<1x16xf32, #tpu.memory_space<vmem>>, %arg8: memref<1x1xf32, #tpu.memory_space<smem>>, %arg9: memref<1xf32, #tpu.memory_space<smem>>, %arg10: memref<8x1xf32, #tpu.memory_space<smem>>, %arg11: memref<8x1xf32, #tpu.memory_space<smem>>, %arg12: memref<2x8xf32, #tpu.memory_space<vmem>>) attributes {dimension_semantics = [], scalar_prefetch = 0 : i64, scratch_operands = 0 : i64, tpu.core_type = #tpu.core_type<tc>} {
    %c0 = arith.constant 0 : index
    %c0_0 = arith.constant 0 : index
    %0 = vector.load %arg0[%c0, %c0_0] : memref<8x8xf32, #tpu.memory_space<vmem>>, vector<8x8xf32>
    %c0_1 = arith.constant 0 : index
    %c0_2 = arith.constant 0 : index
    %1 = vector.load %arg1[%c0_1, %c0_2] : memref<8x8xf32, #tpu.memory_space<vmem>>, vector<8x8xf32>
    %c0_3 = arith.constant 0 : index
    %c0_4 = arith.constant 0 : index
    %2 = vector.load %arg2[%c0_3, %c0_4] : memref<8x8xf32, #tpu.memory_space<vmem>>, vector<8x8xf32>
    %c0_5 = arith.constant 0 : index
    %c0_6 = arith.constant 0 : index
    %3 = vector.load %arg3[%c0_5, %c0_6] : memref<8x8xf32, #tpu.memory_space<vmem>>, vector<8x8xf32>
    %c0_7 = arith.constant 0 : index
    %c0_8 = arith.constant 0 : index
    %4 = vector.load %arg5[%c0_7, %c0_8] : memref<16x32xf32, #tpu.memory_space<vmem>>, vector<8x32xf32>
    %c8 = arith.constant 8 : index
    %c0_9 = arith.constant 0 : index
    %5 = vector.load %arg5[%c8, %c0_9] : memref<16x32xf32, #tpu.memory_space<vmem>>, vector<8x32xf32>
    %c0_10 = arith.constant 0 : index
    %c0_11 = arith.constant 0 : index
    %6 = vector.load %arg6[%c0_10, %c0_11] : memref<1x32xf32, #tpu.memory_space<vmem>>, vector<1x32xf32>
    %c0_12 = arith.constant 0 : index
    %c0_13 = arith.constant 0 : index
    %7 = vector.load %arg7[%c0_12, %c0_13] : memref<1x16xf32, #tpu.memory_space<vmem>>, vector<1x8xf32>
    %c0_14 = arith.constant 0 : index
    %c8_15 = arith.constant 8 : index
    %8 = vector.load %arg7[%c0_14, %c8_15] : memref<1x16xf32, #tpu.memory_space<vmem>>, vector<1x8xf32>
    %c0_16 = arith.constant 0 : index
    %c0_17 = arith.constant 0 : index
    %9 = memref.load %arg8[%c0_16, %c0_17] : memref<1x1xf32, #tpu.memory_space<smem>>
    %cst = arith.constant dense<0.000000e+00> : vector<8x32xf32>
    %10 = tpu.matmul %0, %4, %cst {dimension_numbers = #tpu.dot_dimension_numbers<[1], [0], [0], [1], [0, 0, 1, 1], [], []>} : vector<8x8xf32>, vector<8x32xf32>, vector<8x32xf32> -> vector<8x32xf32>
    %cst_18 = arith.constant dense<0.000000e+00> : vector<8x32xf32>
    %11 = tpu.matmul %1, %5, %cst_18 {dimension_numbers = #tpu.dot_dimension_numbers<[1], [0], [0], [1], [0, 0, 1, 1], [], []>} : vector<8x8xf32>, vector<8x32xf32>, vector<8x32xf32> -> vector<8x32xf32>
    %12 = arith.addf %10, %11 : vector<8x32xf32>
    %13 = vector.broadcast %6 : vector<1x32xf32> to vector<8x32xf32>
    %14 = arith.addf %12, %13 : vector<8x32xf32>
    %cst_19 = arith.constant dense<0.000000e+00> : vector<8x32xf32>
    %15 = tpu.matmul %2, %4, %cst_19 {dimension_numbers = #tpu.dot_dimension_numbers<[1], [0], [0], [1], [0, 0, 1, 1], [], []>} : vector<8x8xf32>, vector<8x32xf32>, vector<8x32xf32> -> vector<8x32xf32>
    %cst_20 = arith.constant dense<0.000000e+00> : vector<8x32xf32>
    %16 = tpu.matmul %3, %5, %cst_20 {dimension_numbers = #tpu.dot_dimension_numbers<[1], [0], [0], [1], [0, 0, 1, 1], [], []>} : vector<8x8xf32>, vector<8x32xf32>, vector<8x32xf32> -> vector<8x32xf32>
    %17 = arith.addf %15, %16 : vector<8x32xf32>
    %18 = vector.broadcast %6 : vector<1x32xf32> to vector<8x32xf32>
    %19 = arith.addf %17, %18 : vector<8x32xf32>
    %cst_21 = arith.constant dense<0.000000e+00> : vector<1x8xf32>
    %20 = tpu.matmul %7, %0, %cst_21 {dimension_numbers = #tpu.dot_dimension_numbers<[1], [1], [0], [0], [0, 0, 1, 0], [], []>} : vector<1x8xf32>, vector<8x8xf32>, vector<1x8xf32> -> vector<1x8xf32>
    %cst_22 = arith.constant dense<0.000000e+00> : vector<1x8xf32>
    %21 = tpu.matmul %8, %1, %cst_22 {dimension_numbers = #tpu.dot_dimension_numbers<[1], [1], [0], [0], [0, 0, 1, 0], [], []>} : vector<1x8xf32>, vector<8x8xf32>, vector<1x8xf32> -> vector<1x8xf32>
    %22 = arith.addf %20, %21 : vector<1x8xf32>
    %23 = vector.broadcast %9 : f32 to vector<1x8xf32>
    %24 = arith.addf %22, %23 : vector<1x8xf32>
    %cst_23 = arith.constant dense<0.000000e+00> : vector<1x8xf32>
    %25 = tpu.matmul %7, %2, %cst_23 {dimension_numbers = #tpu.dot_dimension_numbers<[1], [1], [0], [0], [0, 0, 1, 0], [], []>} : vector<1x8xf32>, vector<8x8xf32>, vector<1x8xf32> -> vector<1x8xf32>
    %cst_24 = arith.constant dense<0.000000e+00> : vector<1x8xf32>
    %26 = tpu.matmul %8, %3, %cst_24 {dimension_numbers = #tpu.dot_dimension_numbers<[1], [1], [0], [0], [0, 0, 1, 0], [], []>} : vector<1x8xf32>, vector<8x8xf32>, vector<1x8xf32> -> vector<1x8xf32>
    %27 = arith.addf %25, %26 : vector<1x8xf32>
    %28 = vector.broadcast %9 : f32 to vector<1x8xf32>
    %29 = arith.addf %27, %28 : vector<1x8xf32>
    %c0_25 = arith.constant 0 : index
    %30 = memref.load %arg9[%c0_25] : memref<1xf32, #tpu.memory_space<smem>>
    %31 = math.absf %30 : f32
    %cst_26 = arith.constant dense<0.000000e+00> : vector<8x8xf32>
    %32 = tpu.matmul %14, %14, %cst_26 {dimension_numbers = #tpu.dot_dimension_numbers<[1], [1], [0], [0], [0, 0, 1, 0], [], []>} : vector<8x32xf32>, vector<8x32xf32>, vector<8x8xf32> -> vector<8x8xf32>
    %cst_27 = arith.constant 1.000000e+00 : f32
    %33 = vector.broadcast %cst_27 : f32 to vector<8x8xf32>
    %34 = arith.addf %32, %33 : vector<8x8xf32>
    %35 = tpu.iota {dimensions = array<i32: 0>} : vector<8x8xi32>
    %36 = tpu.iota {dimensions = array<i32: 1>} : vector<8x8xi32>
    %37 = arith.cmpi eq, %35, %36 : vector<8x8xi32>
    %38 = vector.broadcast %31 : f32 to vector<8x8xf32>
    %39 = arith.addf %34, %38 : vector<8x8xf32>
    %40 = arith.select %37, %39, %34 : vector<8x8xi1>, vector<8x8xf32>
    %c0_28 = arith.constant 0 : index
    %c0_29 = arith.constant 0 : index
    %41 = vector.load %arg4[%c0_28, %c0_29] : memref<1x8xf32, #tpu.memory_space<vmem>>, vector<1x8xf32>
    %42 = arith.negf %24 : vector<1x8xf32>
    %43 = math.exp %42 : vector<1x8xf32>
    %cst_30 = arith.constant 1.000000e+00 : f32
    %44 = vector.broadcast %cst_30 : f32 to vector<1x8xf32>
    %45 = arith.addf %44, %43 : vector<1x8xf32>
    %46 = arith.divf %44, %45 : vector<1x8xf32>
    %47 = arith.subf %41, %46 : vector<1x8xf32>
    %48 = tpu.concatenate %40, %47 in 0 : vector<8x8xf32>, vector<1x8xf32> -> vector<9x8xf32>
    %49 = tpu.iota {dimensions = array<i32: 1>} : vector<9x8xi32>
    %50 = tpu.iota {dimensions = array<i32: 1>} : vector<1x8xi32>
    %51 = vector.extract_strided_slice %48 {offsets = [0, 0], sizes = [1, 1], strides = [1, 1]} : vector<9x8xf32> to vector<1x1xf32>
    %52 = tpu.reciprocal %51 {approx = true} : vector<1x1xf32> -> vector<1x1xf32>
    %53 = arith.mulf %51, %52 : vector<1x1xf32>
    %cst_31 = arith.constant 2.000000e+00 : f32
    %54 = vector.broadcast %cst_31 : f32 to vector<1x1xf32>
    %55 = arith.subf %54, %53 : vector<1x1xf32>
    %56 = arith.mulf %52, %55 : vector<1x1xf32>
    %57 = vector.extract_strided_slice %48 {offsets = [0, 0], sizes = [1, 8], strides = [1, 1]} : vector<9x8xf32> to vector<1x8xf32>
    %58 = vector.extract_strided_slice %48 {offsets = [0, 0], sizes = [9, 1], strides = [1, 1]} : vector<9x8xf32> to vector<9x1xf32>
    %59 = vector.broadcast %56 : vector<1x1xf32> to vector<9x1xf32>
    %60 = arith.mulf %58, %59 : vector<9x1xf32>
    %61 = vector.broadcast %60 : vector<9x1xf32> to vector<9x8xf32>
    %62 = vector.broadcast %57 : vector<1x8xf32> to vector<9x8xf32>
    %63 = arith.mulf %61, %62 : vector<9x8xf32>
    %64 = arith.subf %48, %63 : vector<9x8xf32>
    %c0_i32 = arith.constant 0 : i32
    %65 = vector.broadcast %c0_i32 : i32 to vector<9x8xi32>
    %66 = arith.cmpi eq, %49, %65 : vector<9x8xi32>
    %67 = vector.shape_cast %60 : vector<9x1xf32> to vector<9x1xf32>
    %68 = vector.broadcast %67 : vector<9x1xf32> to vector<9x8xf32>
    %69 = arith.select %66, %68, %64 : vector<9x8xi1>, vector<9x8xf32>
    %70 = vector.extract_strided_slice %69 {offsets = [1, 1], sizes = [1, 1], strides = [1, 1]} : vector<9x8xf32> to vector<1x1xf32>
    %71 = tpu.reciprocal %70 {approx = true} : vector<1x1xf32> -> vector<1x1xf32>
    %72 = arith.mulf %70, %71 : vector<1x1xf32>
    %cst_32 = arith.constant 2.000000e+00 : f32
    %73 = vector.broadcast %cst_32 : f32 to vector<1x1xf32>
    %74 = arith.subf %73, %72 : vector<1x1xf32>
    %75 = arith.mulf %71, %74 : vector<1x1xf32>
    %76 = vector.extract_strided_slice %69 {offsets = [1, 0], sizes = [1, 8], strides = [1, 1]} : vector<9x8xf32> to vector<1x8xf32>
    %77 = vector.extract_strided_slice %69 {offsets = [0, 1], sizes = [9, 1], strides = [1, 1]} : vector<9x8xf32> to vector<9x1xf32>
    %78 = vector.broadcast %75 : vector<1x1xf32> to vector<9x1xf32>
    %79 = arith.mulf %77, %78 : vector<9x1xf32>
    %80 = vector.broadcast %79 : vector<9x1xf32> to vector<9x8xf32>
    %81 = vector.broadcast %76 : vector<1x8xf32> to vector<9x8xf32>
    %82 = arith.mulf %80, %81 : vector<9x8xf32>
    %83 = arith.subf %69, %82 : vector<9x8xf32>
    %c1_i32 = arith.constant 1 : i32
    %84 = vector.broadcast %c1_i32 : i32 to vector<9x8xi32>
    %85 = arith.cmpi eq, %49, %84 : vector<9x8xi32>
    %86 = vector.shape_cast %79 : vector<9x1xf32> to vector<9x1xf32>
    %87 = vector.broadcast %86 : vector<9x1xf32> to vector<9x8xf32>
    %88 = arith.select %85, %87, %83 : vector<9x8xi1>, vector<9x8xf32>
    %89 = vector.extract_strided_slice %88 {offsets = [2, 2], sizes = [1, 1], strides = [1, 1]} : vector<9x8xf32> to vector<1x1xf32>
    %90 = tpu.reciprocal %89 {approx = true} : vector<1x1xf32> -> vector<1x1xf32>
    %91 = arith.mulf %89, %90 : vector<1x1xf32>
    %cst_33 = arith.constant 2.000000e+00 : f32
    %92 = vector.broadcast %cst_33 : f32 to vector<1x1xf32>
    %93 = arith.subf %92, %91 : vector<1x1xf32>
    %94 = arith.mulf %90, %93 : vector<1x1xf32>
    %95 = vector.extract_strided_slice %88 {offsets = [2, 0], sizes = [1, 8], strides = [1, 1]} : vector<9x8xf32> to vector<1x8xf32>
    %96 = vector.extract_strided_slice %88 {offsets = [0, 2], sizes = [9, 1], strides = [1, 1]} : vector<9x8xf32> to vector<9x1xf32>
    %97 = vector.broadcast %94 : vector<1x1xf32> to vector<9x1xf32>
    %98 = arith.mulf %96, %97 : vector<9x1xf32>
    %99 = vector.broadcast %98 : vector<9x1xf32> to vector<9x8xf32>
    %100 = vector.broadcast %95 : vector<1x8xf32> to vector<9x8xf32>
    %101 = arith.mulf %99, %100 : vector<9x8xf32>
    %102 = arith.subf %88, %101 : vector<9x8xf32>
    %c2_i32 = arith.constant 2 : i32
    %103 = vector.broadcast %c2_i32 : i32 to vector<9x8xi32>
    %104 = arith.cmpi eq, %49, %103 : vector<9x8xi32>
    %105 = vector.shape_cast %98 : vector<9x1xf32> to vector<9x1xf32>
    %106 = vector.broadcast %105 : vector<9x1xf32> to vector<9x8xf32>
    %107 = arith.select %104, %106, %102 : vector<9x8xi1>, vector<9x8xf32>
    %108 = vector.extract_strided_slice %107 {offsets = [3, 3], sizes = [1, 1], strides = [1, 1]} : vector<9x8xf32> to vector<1x1xf32>
    %109 = tpu.reciprocal %108 {approx = true} : vector<1x1xf32> -> vector<1x1xf32>
    %110 = arith.mulf %108, %109 : vector<1x1xf32>
    %cst_34 = arith.constant 2.000000e+00 : f32
    %111 = vector.broadcast %cst_34 : f32 to vector<1x1xf32>
    %112 = arith.subf %111, %110 : vector<1x1xf32>
    %113 = arith.mulf %109, %112 : vector<1x1xf32>
    %114 = vector.extract_strided_slice %107 {offsets = [3, 0], sizes = [1, 8], strides = [1, 1]} : vector<9x8xf32> to vector<1x8xf32>
    %115 = vector.extract_strided_slice %107 {offsets = [0, 3], sizes = [9, 1], strides = [1, 1]} : vector<9x8xf32> to vector<9x1xf32>
    %116 = vector.broadcast %113 : vector<1x1xf32> to vector<9x1xf32>
    %117 = arith.mulf %115, %116 : vector<9x1xf32>
    %118 = vector.broadcast %117 : vector<9x1xf32> to vector<9x8xf32>
    %119 = vector.broadcast %114 : vector<1x8xf32> to vector<9x8xf32>
    %120 = arith.mulf %118, %119 : vector<9x8xf32>
    %121 = arith.subf %107, %120 : vector<9x8xf32>
    %c3_i32 = arith.constant 3 : i32
    %122 = vector.broadcast %c3_i32 : i32 to vector<9x8xi32>
    %123 = arith.cmpi eq, %49, %122 : vector<9x8xi32>
    %124 = vector.shape_cast %117 : vector<9x1xf32> to vector<9x1xf32>
    %125 = vector.broadcast %124 : vector<9x1xf32> to vector<9x8xf32>
    %126 = arith.select %123, %125, %121 : vector<9x8xi1>, vector<9x8xf32>
    %127 = vector.extract_strided_slice %126 {offsets = [4, 4], sizes = [1, 1], strides = [1, 1]} : vector<9x8xf32> to vector<1x1xf32>
    %128 = tpu.reciprocal %127 {approx = true} : vector<1x1xf32> -> vector<1x1xf32>
    %129 = arith.mulf %127, %128 : vector<1x1xf32>
    %cst_35 = arith.constant 2.000000e+00 : f32
    %130 = vector.broadcast %cst_35 : f32 to vector<1x1xf32>
    %131 = arith.subf %130, %129 : vector<1x1xf32>
    %132 = arith.mulf %128, %131 : vector<1x1xf32>
    %133 = vector.extract_strided_slice %126 {offsets = [4, 0], sizes = [1, 8], strides = [1, 1]} : vector<9x8xf32> to vector<1x8xf32>
    %134 = vector.extract_strided_slice %126 {offsets = [0, 4], sizes = [9, 1], strides = [1, 1]} : vector<9x8xf32> to vector<9x1xf32>
    %135 = vector.broadcast %132 : vector<1x1xf32> to vector<9x1xf32>
    %136 = arith.mulf %134, %135 : vector<9x1xf32>
    %137 = vector.broadcast %136 : vector<9x1xf32> to vector<9x8xf32>
    %138 = vector.broadcast %133 : vector<1x8xf32> to vector<9x8xf32>
    %139 = arith.mulf %137, %138 : vector<9x8xf32>
    %140 = arith.subf %126, %139 : vector<9x8xf32>
    %c4_i32 = arith.constant 4 : i32
    %141 = vector.broadcast %c4_i32 : i32 to vector<9x8xi32>
    %142 = arith.cmpi eq, %49, %141 : vector<9x8xi32>
    %143 = vector.shape_cast %136 : vector<9x1xf32> to vector<9x1xf32>
    %144 = vector.broadcast %143 : vector<9x1xf32> to vector<9x8xf32>
    %145 = arith.select %142, %144, %140 : vector<9x8xi1>, vector<9x8xf32>
    %146 = vector.extract_strided_slice %145 {offsets = [5, 5], sizes = [1, 1], strides = [1, 1]} : vector<9x8xf32> to vector<1x1xf32>
    %147 = tpu.reciprocal %146 {approx = true} : vector<1x1xf32> -> vector<1x1xf32>
    %148 = arith.mulf %146, %147 : vector<1x1xf32>
    %cst_36 = arith.constant 2.000000e+00 : f32
    %149 = vector.broadcast %cst_36 : f32 to vector<1x1xf32>
    %150 = arith.subf %149, %148 : vector<1x1xf32>
    %151 = arith.mulf %147, %150 : vector<1x1xf32>
    %152 = vector.extract_strided_slice %145 {offsets = [5, 0], sizes = [1, 8], strides = [1, 1]} : vector<9x8xf32> to vector<1x8xf32>
    %153 = vector.extract_strided_slice %145 {offsets = [0, 5], sizes = [9, 1], strides = [1, 1]} : vector<9x8xf32> to vector<9x1xf32>
    %154 = vector.broadcast %151 : vector<1x1xf32> to vector<9x1xf32>
    %155 = arith.mulf %153, %154 : vector<9x1xf32>
    %156 = vector.broadcast %155 : vector<9x1xf32> to vector<9x8xf32>
    %157 = vector.broadcast %152 : vector<1x8xf32> to vector<9x8xf32>
    %158 = arith.mulf %156, %157 : vector<9x8xf32>
    %159 = arith.subf %145, %158 : vector<9x8xf32>
    %c5_i32 = arith.constant 5 : i32
    %160 = vector.broadcast %c5_i32 : i32 to vector<9x8xi32>
    %161 = arith.cmpi eq, %49, %160 : vector<9x8xi32>
    %162 = vector.shape_cast %155 : vector<9x1xf32> to vector<9x1xf32>
    %163 = vector.broadcast %162 : vector<9x1xf32> to vector<9x8xf32>
    %164 = arith.select %161, %163, %159 : vector<9x8xi1>, vector<9x8xf32>
    %165 = vector.extract_strided_slice %164 {offsets = [6, 6], sizes = [1, 1], strides = [1, 1]} : vector<9x8xf32> to vector<1x1xf32>
    %166 = tpu.reciprocal %165 {approx = true} : vector<1x1xf32> -> vector<1x1xf32>
    %167 = arith.mulf %165, %166 : vector<1x1xf32>
    %cst_37 = arith.constant 2.000000e+00 : f32
    %168 = vector.broadcast %cst_37 : f32 to vector<1x1xf32>
    %169 = arith.subf %168, %167 : vector<1x1xf32>
    %170 = arith.mulf %166, %169 : vector<1x1xf32>
    %171 = vector.extract_strided_slice %164 {offsets = [6, 0], sizes = [1, 8], strides = [1, 1]} : vector<9x8xf32> to vector<1x8xf32>
    %172 = vector.extract_strided_slice %164 {offsets = [0, 6], sizes = [9, 1], strides = [1, 1]} : vector<9x8xf32> to vector<9x1xf32>
    %173 = vector.broadcast %170 : vector<1x1xf32> to vector<9x1xf32>
    %174 = arith.mulf %172, %173 : vector<9x1xf32>
    %175 = vector.broadcast %174 : vector<9x1xf32> to vector<9x8xf32>
    %176 = vector.broadcast %171 : vector<1x8xf32> to vector<9x8xf32>
    %177 = arith.mulf %175, %176 : vector<9x8xf32>
    %178 = arith.subf %164, %177 : vector<9x8xf32>
    %c6_i32 = arith.constant 6 : i32
    %179 = vector.broadcast %c6_i32 : i32 to vector<9x8xi32>
    %180 = arith.cmpi eq, %49, %179 : vector<9x8xi32>
    %181 = vector.shape_cast %174 : vector<9x1xf32> to vector<9x1xf32>
    %182 = vector.broadcast %181 : vector<9x1xf32> to vector<9x8xf32>
    %183 = arith.select %180, %182, %178 : vector<9x8xi1>, vector<9x8xf32>
    %184 = vector.extract_strided_slice %183 {offsets = [7, 7], sizes = [1, 1], strides = [1, 1]} : vector<9x8xf32> to vector<1x1xf32>
    %185 = tpu.reciprocal %184 {approx = true} : vector<1x1xf32> -> vector<1x1xf32>
    %186 = arith.mulf %184, %185 : vector<1x1xf32>
    %cst_38 = arith.constant 2.000000e+00 : f32
    %187 = vector.broadcast %cst_38 : f32 to vector<1x1xf32>
    %188 = arith.subf %187, %186 : vector<1x1xf32>
    %189 = arith.mulf %185, %188 : vector<1x1xf32>
    %190 = vector.extract_strided_slice %183 {offsets = [7, 0], sizes = [1, 8], strides = [1, 1]} : vector<9x8xf32> to vector<1x8xf32>
    %191 = vector.extract_strided_slice %183 {offsets = [8, 7], sizes = [1, 1], strides = [1, 1]} : vector<9x8xf32> to vector<1x1xf32>
    %192 = arith.mulf %191, %189 : vector<1x1xf32>
    %193 = vector.extract_strided_slice %183 {offsets = [8, 0], sizes = [1, 8], strides = [1, 1]} : vector<9x8xf32> to vector<1x8xf32>
    %194 = vector.broadcast %192 : vector<1x1xf32> to vector<1x8xf32>
    %195 = arith.mulf %194, %190 : vector<1x8xf32>
    %196 = arith.subf %193, %195 : vector<1x8xf32>
    %c7_i32 = arith.constant 7 : i32
    %197 = vector.broadcast %c7_i32 : i32 to vector<1x8xi32>
    %198 = arith.cmpi eq, %50, %197 : vector<1x8xi32>
    %199 = vector.shape_cast %192 : vector<1x1xf32> to vector<1x1xf32>
    %200 = vector.broadcast %199 : vector<1x1xf32> to vector<1x8xf32>
    %201 = arith.select %198, %200, %196 : vector<1x8xi1>, vector<1x8xf32>
    %cst_39 = arith.constant dense<0.000000e+00> : vector<1xf32>
    %202 = vector.multi_reduction <add>, %201, %cst_39 [1] : vector<1x8xf32> to vector<1xf32>
    %203 = vector.shape_cast %202 : vector<1xf32> to vector<1x1xf32>
    %cst_40 = arith.constant dense<0.000000e+00> : vector<1x32xf32>
    %204 = tpu.matmul %201, %14, %cst_40 {dimension_numbers = #tpu.dot_dimension_numbers<[1], [0], [0], [1], [0, 0, 1, 1], [], []>} : vector<1x8xf32>, vector<8x32xf32>, vector<1x32xf32> -> vector<1x32xf32>
    %cst_41 = arith.constant dense<0.000000e+00> : vector<1x8xf32>
    %205 = tpu.matmul %204, %19, %cst_41 {dimension_numbers = #tpu.dot_dimension_numbers<[1], [1], [0], [0], [0, 0, 1, 0], [], []>} : vector<1x32xf32>, vector<8x32xf32>, vector<1x8xf32> -> vector<1x8xf32>
    %206 = vector.broadcast %203 : vector<1x1xf32> to vector<1x8xf32>
    %207 = arith.addf %205, %206 : vector<1x8xf32>
    %c7 = arith.constant 7 : index
    %c0_42 = arith.constant 0 : index
    %208 = memref.load %arg10[%c7, %c0_42] : memref<8x1xf32, #tpu.memory_space<smem>>
    %209 = math.absf %208 : f32
    %c7_43 = arith.constant 7 : index
    %c0_44 = arith.constant 0 : index
    %210 = memref.load %arg11[%c7_43, %c0_44] : memref<8x1xf32, #tpu.memory_space<smem>>
    %211 = vector.broadcast %209 : f32 to vector<1x8xf32>
    %212 = arith.mulf %207, %211 : vector<1x8xf32>
    %213 = vector.broadcast %210 : f32 to vector<1x8xf32>
    %214 = arith.addf %212, %213 : vector<1x8xf32>
    %215 = arith.addf %214, %29 : vector<1x8xf32>
    %c0_45 = arith.constant 0 : index
    %c0_46 = arith.constant 0 : index
    %216 = vector.load %arg12[%c0_45, %c0_46] : memref<2x8xf32, #tpu.memory_space<vmem>>, vector<1x8xf32>
    tpu.vector_store %arg12[%c0_45, %c0_46], %215 {strides = array<i32>} : memref<2x8xf32, #tpu.memory_space<vmem>>, vector<1x8xf32>,
    %c1 = arith.constant 1 : index
    %c0_47 = arith.constant 0 : index
    %217 = vector.load %arg12[%c1, %c0_47] : memref<2x8xf32, #tpu.memory_space<vmem>>, vector<1x8xf32>
    tpu.vector_store %arg12[%c1, %c0_47], %207 {strides = array<i32>} : memref<2x8xf32, #tpu.memory_space<vmem>>, vector<1x8xf32>,
    return
  }
}

</mosaic_0001>

<bundles_post_ra>
// kernel: resus_rr_forward.1
= control target key start
LH: loop header
LB: loop body
LE: loop exit
PB: predicated region body
PF: predicated region fallthrough
CT: control target
= control target key end

     0   :  { %19 = vsyncpa [#allocation5], 0  ;;  %s1667_s0 = inlined_call_operand.vmem [shape: f32[8,8], index: 0, kind: input, shape index: {}]   ;;  %s1668_s1 = inlined_call_operand.vmem [shape: f32[8,8], index: 1, kind: input, shape index: {}]   ;;  %s1669_s2 = inlined_call_operand.vmem [shape: f32[8,8], index: 2, kind: input, shape index: {}]   ;;  %s1670_s3 = inlined_call_operand.vmem [shape: f32[8,8], index: 3, kind: input, shape index: {}]   ;;  %s1671_s4 = inlined_call_operand.vmem [shape: f32[1,8], index: 4, kind: input, shape index: {}]   ;;  %s1672_s5 = inlined_call_operand.vmem [shape: f32[16,32], index: 5, kind: input, shape index: {}]   ;;  %s1673_s6 = inlined_call_operand.hbm [shape: f32[1,32], index: 6, kind: input, shape index: {}]   ;;  %s1674_s7 = inlined_call_operand.hbm [shape: f32[1,16], index: 7, kind: input, shape index: {}]   ;;  %s1675_s8 = inlined_call_operand.<no memory space> [shape: f32[1,1], index: 8, kind: input, shape index: {}]   ;;  %s1676_s9 = inlined_call_operand.<no memory space> [shape: f32[1], index: 9, kind: input, shape index: {}]   ;;  %s1677_s10 = inlined_call_operand.vmem [shape: f32[8,1], index: 10, kind: input, shape index: {}]   ;;  %s1678_s11 = inlined_call_operand.vmem [shape: f32[8,1], index: 11, kind: input, shape index: {}]   ;;  %s1679_s12 = inlined_call_operand.vmem [shape: f32[2,8], index: 12, kind: output, shape index: {}]  }
   0x1   :  { %20 = vsyncpa [#allocation8], 0 }
   0x2   :  { %21 = vsyncpa [#allocation6], 0 }
   0x3   :  { %22 = vsyncpa [#allocation11], 0  ;;  %s1420_s21 = smov [#allocation4]   ;;  %s1421_s23 = smov [#allocation7]  }
   0x4   :  { %s41_s22 = sshll.u32 %s1420_s21, 4  ;;  %s51_s24 = sshll.u32 %s1421_s23, 4  ;;  %s42_s22 = int_to_ptr.vmem [resolvable:$true] %s41_s22  ;;  %s52_s24 = int_to_ptr.vmem [resolvable:$true] %s51_s24 }
   0x5   :  { %s1344_s27 = scalar_lea.hbm %s1673_s6, 16 }
   0x6   :  { %p1345_p0 = scmp.ne.s32.totalorder %s1673_s6, %s1344_s27  ;;  %p1348_p1 = scmp.lt.u32.totalorder %s1344_s27, %s1673_s6 }
   0x8   :  { %p1350_p2 = pnand %p1348_p1, %p1345_p0 }
   0xa   :  { %1353 = shalt.err (!%p1350_p2)
}
   0xb   :  { %s1354_s14 = scalar_lea.vmem %s42_s22, 16  ;;  %s1358_s15 = scalar_lea.vmem %s42_s22, 32 }
   0xc   :  { %p1355_p3 = scmp.ne.s32.totalorder %s42_s22, %s1354_s14  ;;  %p1359_p4 = scmp.lt.s32.totalorder %s42_s22, %s42_s22 }
   0xd   :  { %p1360_p5 = scmp.lt.s32.totalorder %s1358_s15, %s1354_s14 }
   0xf   :  { %p1361_p6 = por %p1360_p5, %p1359_p4 }
  0x11   :  { %p1362_p7 = pnand %p1361_p6, %p1355_p3 }
  0x13   :  { %1365 = shalt.err (!%p1362_p7)
}
  0x14   :  { %44 = dma.hbm_to_vmem [thread:$0]  %s1673_s6, 16, %s42_s22, [#allocation5]  }
  0x15   :  { %s1366_s20 = scalar_lea.hbm %s1674_s7, 16 }
  0x16   :  { %p1367_p8 = scmp.ne.s32.totalorder %s1674_s7, %s1366_s20  ;;  %p1370_p9 = scmp.lt.u32.totalorder %s1366_s20, %s1674_s7 }
  0x18   :  { %p1372_p10 = pnand %p1370_p9, %p1367_p8 }
  0x1a   :  { %1375 = shalt.err (!%p1372_p10)
}
  0x1b   :  { %s1376_s27 = scalar_lea.vmem %s52_s24, 16  ;;  %s1380_s28 = scalar_lea.vmem %s52_s24, 32 }
  0x1c   :  { %p1377_p11 = scmp.ne.s32.totalorder %s52_s24, %s1376_s27  ;;  %p1381_p12 = scmp.lt.s32.totalorder %s52_s24, %s52_s24 }
  0x1d   :  { %p1382_p13 = scmp.lt.s32.totalorder %s1380_s28, %s1376_s27 }
  0x1f   :  { %p1383_p0 = por %p1382_p13, %p1381_p12 }
  0x21   :  { %p1384_p1 = pnand %p1383_p0, %p1377_p11 }
  0x23   :  { %1387 = shalt.err (!%p1384_p1)
}
  0x24   :  { %54 = dma.hbm_to_vmem [thread:$0]  %s1674_s7, 16, %s52_s24, [#allocation8]  }
  0x25   :  { %s65_s13 = sshll.u32 %s1677_s10, 4  ;;  %s75_s16 = sshll.u32 %s1678_s11, 4  ;;  %s66_s13 = int_to_ptr.vmem [resolvable:$true] %s65_s13  ;;  %s76_s16 = int_to_ptr.vmem [resolvable:$true] %s75_s16 }
  0x26   :  { %s1388_s17 = scalar_lea.vmem %s66_s13, 128  ;;  %p1393_p3 = scmp.lt.s32.totalorder %s66_s13, %s66_s13 }
  0x27   :  { %p1389_p2 = scmp.ne.s32.totalorder %s66_s13, %s1388_s17  ;;  %p1394_p4 = scmp.lt.s32.totalorder %s1388_s17, %s1388_s17 }
  0x29   :  { %p1395_p5 = por %p1394_p4, %p1393_p3 }
  0x2b   :  { %p1396_p6 = pnand %p1395_p5, %p1389_p2 }
  0x2d   :  { %1399 = shalt.err (!%p1396_p6)
}
  0x2e   :  { %s1422_s18 = smov [#allocation9]   ;;  %s1400_s7 = scalar_lea.vmem %s76_s16, 128 }
  0x2f   :  { %68 = dma.vmem_to_smem %s66_s13, 128, %s1422_s18, [#allocation6]  }
  0x30   :  { %p1401_p7 = scmp.ne.s32.totalorder %s76_s16, %s1400_s7  ;;  %p1405_p8 = scmp.lt.s32.totalorder %s76_s16, %s76_s16 }
  0x31   :  { %p1406_p9 = scmp.lt.s32.totalorder %s1400_s7, %s1400_s7 }
  0x33   :  { %p1407_p10 = por %p1406_p9, %p1405_p8 }
  0x35   :  { %p1408_p11 = pnand %p1407_p10, %p1401_p7 }
  0x37   :  { %1411 = shalt.err (!%p1408_p11)
}
  0x38   :  { %s1423_s10 = smov [#allocation10]  }
  0x39   :  { %78 = dma.vmem_to_smem %s76_s16, 128, %s1423_s10, [#allocation11]  }
  0x3a   :  { %1412 = dma.done.wait [#allocation5], 16  }
  0x3b   :  { %1413 = vsyncadd [#allocation5], 4294967280 }
  0x3c   :  { %1414 = dma.done.wait [#allocation8], 16  }
  0x3d   :  { %1415 = vsyncadd [#allocation8], 4294967280 }
  0x3e   :  { %1416 = dma.done.wait [#allocation6], 128  }
  0x3f   :  { %1417 = vsyncadd [#allocation6], 4294967168 }
  0x40   :  { %1418 = dma.done.wait [#allocation11], 128  }
  0x41   :  { %1419 = vsyncadd [#allocation11], 4294967168 }
  0x42   :  { %91 = sfence }
  0x43   :  { %v97_v0 = vld [vmem:[%s1672_s5 + $0x8] sm:$0xff]  ;;  %v96_v1 = vld [vmem:[%s1672_s5] sm:$0xff]  ;;  %v403_v2 = vlaneseq  ;;  %v1424_v3 = vmov 0.0   ;;  %vm101_vm0 = vcmask 64512   ;;  %vm1425_vm1 = vmmov 0   ;;  %s1426_s28 = smov 120  }
  0x44   :  { %1239 = vmatprep.subr.mxu0 %v1424_v3  ;;  %1244 = vmatprep.subr.mxu1 %v1424_v3  ;;  %v93_v4 = vld [vmem:[%s1668_s1] sm:$0xff]  ;;  %vm698_vm2 = vcmask 261120   ;;  %v1427_v30 = vmov 0   ;;  %v553_v34 = vstv %s1675_s8  ;;  %s697_s29 = sand.u32 2147483647, %s1676_s9  ;;  %v1428_v52 = vmov 1  }
  0x45   :  { %v92_v5 = vld [vmem:[%s1667_s0] sm:$0xff]  ;;  %1240 = vmatpush3.msra.mxu0 %v97_v0  ;;  %1241 = vmatprep.mubr.msk.f32.mxu0 %vm1425_vm1, %v1424_v3  ;;  %v1547_v6 = vshrl.u32 %v403_v2, 7  ;;  %v1612_v39 = vand.u32 127, %v403_v2  ;;  %v777_v41 = vstv %s697_s29  ;;  %vm1025_vm12 = vcmask 57344   ;;  %s1216_s30 = sld [smem:[#allocation10 + $0x380]] }
  0x46   :  { %1245 = vmatpush3.msra.mxu1 %v96_v1  ;;  %1246 = vmatprep.mubr.msk.f32.mxu1 %vm1425_vm1, %v1424_v3  ;;  %v99_v7 = vld [vmem:[#allocation7] sm:$0x1]  ;;  %v1198_v14 = vld [vmem:[#allocation4] ss:$0 sm:$0xff] }
  0x47   :  { %1242 = vmatmul.mubr.msk.f32.vlgmr.msra.gmra.mrb[0].mxu0 %vm101_vm0, %v93_v4  ;;  %1247 = vmatmul.mubr.msk.f32.vlgmr.msra.gmra.mrb[0].mxu1 %vm101_vm0, %v92_v5  ;;  %v1554_v8 = vsub.s32 0, %v1547_v6  ;;  %v95_v9 = vld [vmem:[%s1670_s3] sm:$0xff]  ;;  %vm776_vm3 = vcmp.eq.s32.totalorder %v1547_v6, %v1612_v39  ;;  %vm816_vm4 = vcmp.eq.s32.totalorder %v1612_v39, 0  ;;  %v825_v2 = vsub.s32 1, %v1547_v6 }
  0x48   :  { %1249 = vmatprep.subr.mxu0 %v1424_v3  ;;  %1254 = vmatprep.subr.mxu1 %v1424_v3  ;;  %v94_v11 = vld [vmem:[%s1669_s2] sm:$0xff]  ;;  %vm847_vm5 = vcmp.eq.s32.totalorder %v1612_v39, 1  ;;  %vm878_vm6 = vcmp.eq.s32.totalorder %v1612_v39, 2  ;;  %vm909_vm7 = vcmp.eq.s32.totalorder %v1612_v39, 3  ;;  %vm940_vm8 = vcmp.eq.s32.totalorder %v1612_v39, 4 }
  0x49   :  { %v406_v10 = vrot.slane %v99_v7, %v1554_v8  ;;  %1250 = vmatpush3.msra.mxu0 %v97_v0  ;;  %1255 = vmatpush3.msra.mxu1 %v96_v1  ;;  %vm971_vm9 = vcmp.eq.s32.totalorder %v1612_v39, 5  ;;  %vm1002_vm10 = vcmp.eq.s32.totalorder %v1612_v39, 6  ;;  %vm1023_vm11 = vcmp.eq.s32.totalorder %v1612_v39, 7 }
  0x4a   :  { %1251 = vmatprep.mubr.msk.f32.mxu0 %vm1425_vm1, %v1424_v3  ;;  %1256 = vmatprep.mubr.msk.f32.mxu1 %vm1425_vm1, %v1424_v3 }
  0x4b   :  { %407 = vrot.lane.b32.xlu0 %v406_v10, %s1426_s28  ;;  %1252 = vmatmul.mubr.msk.f32.vlgmr.msra.gmra.mrb[2].mxu0 %vm101_vm0, %v95_v9  ;;  %v1429_v10 = vmov 2  }
  0x4c   :  { %1259 = vmatprep.subr.mxu0 %v1424_v3  ;;  %1257 = vmatmul.mubr.msk.f32.vlgmr.msra.gmra.mrb[2].mxu1 %vm101_vm0, %v94_v11 }
  0x4d   :  { %1264 = vmatprep.subr.mxu1 %v1424_v3  ;;  %1261 = vmatprep.mubr.msk.f32.mxu0 %vm1425_vm1, %v1424_v3 }
  0x4e   :  { %1266 = vmatprep.mubr.msk.f32.mxu1 %vm1425_vm1, %v1424_v3  ;;  %1309 = vset.pattern.permute.xlu0 %v1427_v30 }
  0x4f   :  { %1310 = vset.pattern.permute.xlu1 %v1428_v52 }
  0x50   :  { %1260 = vmatpush3.xpose.msk.msra.mxu0 %vm101_vm0, %v93_v4  ;;  %1265 = vmatpush3.xpose.msk.msra.mxu1 %vm101_vm0, %v92_v5  ;;  %v780_v5 = vld [vmem:[%s1671_s4] sm:$0x1]  ;;  %s1215_s4 = sld [smem:[#allocation9 + $0x380]] }
  0x51   :  { %1269 = vmatprep.subr.mxu0 %v1424_v3  ;;  %1274 = vmatprep.subr.mxu1 %v1424_v3 }
  0x53   :  { %1267 = vmatmul.mubr.msk.f32.vlgmr.msra.gmra.mrb[4].mxu1 %vm101_vm0, %v99_v7 }
  0x54   :  { %1275 = vmatpush3.xpose.msk.msra.mxu1 %vm101_vm0, %v94_v11  ;;  %1276 = vmatprep.mubr.msk.f32.mxu1 %vm1425_vm1, %v1424_v3 }
  0x55   :  { %1284 = vmatprep.subr.mxu1 %v1424_v3 }
  0x56   :  { %s1179_s13 = sand.u32 2147483647, %s1215_s4 }
  0x57   :  { %1277 = vmatmul.mubr.msk.f32.vlgmr.msra.gmra.mrb[6].mxu1 %vm101_vm0, %v99_v7 }
  0x58   :  { %1286 = vmatprep.mubr.msk.f32.mxu1 %vm1425_vm1, %v1424_v3 }
  0xbd   :  { %v408_v12 = vpop.permute.xlu0 %407 }
  0xbe   :  { %1262 = vmatmul.mubr.msk.f32.vlgmr.msra.gmra.mrb[4].mxu0 %vm101_vm0, %v408_v12 }
  0xbf   :  { %1270 = vmatpush3.xpose.msk.msra.mxu0 %vm101_vm0, %v95_v9  ;;  %1271 = vmatprep.mubr.msk.f32.mxu0 %vm1425_vm1, %v1424_v3 }
  0xc0   :  { %1279 = vmatprep.subr.mxu0 %v1424_v3 }
  0xc2   :  { %1272 = vmatmul.mubr.msk.f32.vlgmr.msra.gmra.mrb[6].mxu0 %vm101_vm0, %v408_v12 }
  0xc3   :  { %1281 = vmatprep.mubr.msk.f32.mxu0 %vm1425_vm1, %v1424_v3 }
 0x11a   :  { %v171_v13 = vpop.f32.mrb[0].mxu0  ;;  %v244_v15 = vpop.f32.mrb[0].mxu1 }
 0x11b   :  { %v245_v16 = vadd.f32 %v244_v15, %v171_v13  ;;  %v1243_v17 = vpop.f32.mrb[1].mxu0  ;;  %v1248_v18 = vpop.f32.mrb[1].mxu1 }
 0x11d   :  { %v254_v19 = vadd.f32 %v1198_v14, %v245_v16 }
 0x11e   :  { %v324_v20 = vpop.f32.mrb[2].mxu0 }
 0x11f   :  { %1280 = vmatpush3.xpose.msk.msra.mxu0 %vm698_vm2, %v254_v19  ;;  %1285 = vmatpush3.msra.mxu1 %v254_v19  ;;  %v1253_v21 = vpop.f32.mrb[3].mxu0  ;;  %v397_v22 = vpop.f32.mrb[2].mxu1 }
 0x120   :  { %v398_v23 = vadd.f32 %v397_v22, %v324_v20  ;;  %v1258_v24 = vpop.f32.mrb[3].mxu1  ;;  %1289 = vmatprep.subr.mxu0 %v1424_v3 }
 0x122   :  { %1282 = vmatmul.mubr.msk.f32.vlgmr.msra.gmra.mrb[8].mxu0 %vm698_vm2, %v254_v19  ;;  %v401_v25 = vadd.f32 %v1198_v14, %v398_v23 }
 0x123   :  { %1291 = vmatprep.mubr.msk.f32.mxu0 %vm1425_vm1, %v1424_v3 }
 0x124   :  { %1290 = vmatpush3.xpose.msk.msra.mxu0 %vm698_vm2, %v401_v25  ;;  %v856_v25 = vsub.s32 2, %v1547_v6 }
 0x126   :  { %v549_v26 = vpop.f32.mrb[4].mxu1 }
 0x127   :  { %v1268_v27 = vpop.f32.mrb[5].mxu1 }
 0x12a   :  { %v691_v28 = vpop.f32.mrb[6].mxu1 }
 0x12b   :  { %v1278_v29 = vpop.f32.mrb[7].mxu1 }
 0x191   :  { %v477_v31 = vpop.f32.mrb[4].mxu0 }
 0x192   :  { %v1263_v32 = vpop.f32.mrb[5].mxu0  ;;  %v550_v33 = vadd.f32 %v549_v26, %v477_v31 }
 0x194   :  { %v554_v53 = vadd.f32 %v553_v34, %v550_v33 }
 0x195   :  { %v621_v35 = vpop.f32.mrb[6].mxu0 }
 0x196   :  { %v1273_v36 = vpop.f32.mrb[7].mxu0  ;;  %v692_v37 = vadd.f32 %v691_v28, %v621_v35  ;;  %v1211_v54 = vmul.f32 -1.442695, %v554_v53  ;;  %v1430_v28 = vmov 3  }
 0x198   :  { %v1606_v38 = vadd.f32 %v692_v37, %v553_v34 }
 0x1f5   :  { %v768_v40 = vpop.f32.mrb[8].mxu0 }
 0x1f6   :  { %v769_v42 = vadd.f32 1.0, %v768_v40  ;;  %v1283_v43 = vpop.f32.mrb[9].mxu0 }
 0x1f8   :  { %v778_v44 = vadd.f32 %v777_v41, %v769_v42 }
 0x1fa   :  { %v779_v45 = vsel %vm776_vm3, %v778_v44, %v769_v42  ;;  %v887_v42 = vsub.s32 3, %v1547_v6 }
 0x1fb   :  { %1324 = vrcp.f32 %v779_v45  ;;  %v811_v55 = vrot.slane %v779_v45, %v1554_v8 }
 0x1fc   :  { %1326 = vpow2.f32 %v1211_v54 }
 0x205   :  { %v1325_v46 = vpop.eup %1324 }
 0x206   :  { %v789_v47 = vmul.f32 %v1325_v46, %v779_v45  ;;  %v1327_v60 = vpop.eup %1326 }
 0x207   :  { %v784_v61 = vadd.f32 1.0, %v1327_v60 }
 0x208   :  { %v790_v48 = vsub.f32 2.0, %v789_v47 }
 0x20a   :  { %v791_v49 = vmul.f32 %v1325_v46, %v790_v48  ;;  %v1431_v48 = vmov 4  }
 0x20c   :  { %v795_v50 = vrot.slane %v791_v49, %v1554_v8 }
 0x20e   :  { %v796_v51 = vmul.f32 %v795_v50, %v779_v45 }
 0x210   :  { %800 = vperm.xlu0 %1309, %v796_v51  }
 0x214   :  { %1313 = vset.pattern.permute.xlu0 %v1428_v52 }
 0x28f   :  { %v801_v56 = vpop.permute.xlu0 %800 }
 0x290   :  { %v812_v57 = vmul.f32 %v811_v55, %v801_v56 }
 0x292   :  { %v814_v58 = vsub.f32 %v779_v45, %v812_v57 }
 0x294   :  { %v817_v59 = vsel %vm816_vm4, %v801_v56, %v814_v58 }
 0x295   :  { %1328 = vrcp.f32 %v817_v59  ;;  %v842_v11 = vrot.slane %v817_v59, %v825_v2 }
 0x296   :  { %1330 = vrcp.f32 %v784_v61 }
 0x29f   :  { %v1329_v62 = vpop.eup %1328 }
 0x2a0   :  { %v820_v63 = vmul.f32 %v1329_v62, %v817_v59  ;;  %v1331_v3 = vpop.eup %1330 }
 0x2a1   :  { %v787_v8 = vsub.f32 %v780_v5, %v1331_v3 }
 0x2a2   :  { %v821_v0 = vsub.f32 2.0, %v820_v63  ;;  %v918_v63 = vsub.s32 4, %v1547_v6 }
 0x2a3   :  { %v797_v9 = vmul.f32 %v795_v50, %v787_v8 }
 0x2a4   :  { %v822_v1 = vmul.f32 %v1329_v62, %v821_v0 }
 0x2a6   :  { %v826_v4 = vrot.slane %v822_v1, %v825_v2  ;;  %v1432_v2 = vmov 5  }
 0x2a8   :  { %v827_v7 = vmul.f32 %v826_v4, %v817_v59 }
 0x2aa   :  { %831 = vperm.xlu1 %1310, %v827_v7  }
 0x2ae   :  { %1311 = vset.pattern.permute.xlu1 %v1427_v30 }
 0x2af   :  { %805 = vperm.xlu1 %1311, %v797_v9  }
 0x2b3   :  { %1312 = vset.pattern.permute.xlu1 %v1429_v10 }
 0x329   :  { %v832_v12 = vpop.permute.xlu1 %831 }
 0x32a   :  { %v843_v13 = vmul.f32 %v842_v11, %v832_v12 }
 0x32c   :  { %v845_v14 = vsub.f32 %v817_v59, %v843_v13 }
 0x32e   :  { %v848_v15 = vsel %vm847_vm5, %v832_v12, %v845_v14  ;;  %v806_v16 = vpop.permute.xlu1 %805 }
 0x32f   :  { %1332 = vrcp.f32 %v848_v15  ;;  %v813_v17 = vmul.f32 %v811_v55, %v806_v16  ;;  %v873_v29 = vrot.slane %v848_v15, %v856_v25 }
 0x331   :  { %v815_v18 = vsub.f32 %v787_v8, %v813_v17 }
 0x333   :  { %v818_v19 = vsel %vm816_vm4, %v806_v16, %v815_v18  ;;  %v949_v18 = vsub.s32 5, %v1547_v6 }
 0x334   :  { %v828_v20 = vmul.f32 %v826_v4, %v818_v19 }
 0x336   :  { %836 = vperm.xlu0 %1313, %v828_v20  }
 0x339   :  { %v1333_v21 = vpop.eup %1332 }
 0x33a   :  { %v851_v22 = vmul.f32 %v1333_v21, %v848_v15  ;;  %1316 = vset.pattern.permute.xlu0 %v1430_v28 }
 0x33c   :  { %v852_v23 = vsub.f32 2.0, %v851_v22 }
 0x33e   :  { %v853_v24 = vmul.f32 %v1333_v21, %v852_v23  ;;  %v1433_v21 = vmov 6  }
 0x340   :  { %v857_v26 = vrot.slane %v853_v24, %v856_v25 }
 0x342   :  { %v858_v27 = vmul.f32 %v857_v26, %v848_v15 }
 0x344   :  { %862 = vperm.xlu1 %1312, %v858_v27  }
 0x348   :  { %1314 = vset.pattern.permute.xlu1 %v1430_v28 }
 0x3b5   :  { %v837_v35 = vpop.permute.xlu0 %836 }
 0x3b6   :  { %v844_v37 = vmul.f32 %v842_v11, %v837_v35 }
 0x3b8   :  { %v846_v43 = vsub.f32 %v818_v19, %v844_v37 }
 0x3ba   :  { %v849_v46 = vsel %vm847_vm5, %v837_v35, %v846_v43 }
 0x3bb   :  { %v859_v47 = vmul.f32 %v857_v26, %v849_v46 }
 0x3c3   :  { %v863_v30 = vpop.permute.xlu1 %862 }
 0x3c4   :  { %v874_v31 = vmul.f32 %v873_v29, %v863_v30 }
 0x3c6   :  { %v876_v32 = vsub.f32 %v848_v15, %v874_v31 }
 0x3c8   :  { %v879_v33 = vsel %vm878_vm6, %v863_v30, %v876_v32 }
 0x3c9   :  { %1334 = vrcp.f32 %v879_v33  ;;  %v904_v49 = vrot.slane %v879_v33, %v887_v42 }
 0x3d3   :  { %v1335_v34 = vpop.eup %1334 }
 0x3d4   :  { %v882_v36 = vmul.f32 %v1335_v34, %v879_v33 }
 0x3d6   :  { %v883_v40 = vsub.f32 2.0, %v882_v36  ;;  %v980_v36 = vsub.s32 6, %v1547_v6 }
 0x3d8   :  { %v884_v41 = vmul.f32 %v1335_v34, %v883_v40 }
 0x3da   :  { %v888_v44 = vrot.slane %v884_v41, %v887_v42 }
 0x3dc   :  { %v889_v45 = vmul.f32 %v888_v44, %v879_v33 }
 0x3de   :  { %893 = vperm.xlu1 %1314, %v889_v45  }
 0x3e2   :  { %1315 = vset.pattern.permute.xlu1 %v1429_v10 }
 0x3e3   :  { %867 = vperm.xlu1 %1315, %v859_v47  }
 0x3e7   :  { %1317 = vset.pattern.permute.xlu1 %v1431_v48 }
 0x45d   :  { %v894_v50 = vpop.permute.xlu1 %893 }
 0x45e   :  { %v905_v51 = vmul.f32 %v904_v49, %v894_v50 }
 0x460   :  { %v907_v52 = vsub.f32 %v879_v33, %v905_v51 }
 0x462   :  { %v910_v53 = vsel %vm909_vm7, %v894_v50, %v907_v52  ;;  %v868_v54 = vpop.permute.xlu1 %867 }
 0x463   :  { %1336 = vrcp.f32 %v910_v53  ;;  %v875_v55 = vmul.f32 %v873_v29, %v868_v54  ;;  %v935_v9 = vrot.slane %v910_v53, %v918_v63 }
 0x465   :  { %v877_v56 = vsub.f32 %v849_v46, %v875_v55  ;;  %v1434_v46 = vmov 7  }
 0x467   :  { %v880_v57 = vsel %vm878_vm6, %v868_v54, %v877_v56 }
 0x468   :  { %v890_v58 = vmul.f32 %v888_v44, %v880_v57 }
 0x46a   :  { %898 = vperm.xlu0 %1316, %v890_v58  }
 0x46d   :  { %v1337_v59 = vpop.eup %1336 }
 0x46e   :  { %v913_v60 = vmul.f32 %v1337_v59, %v910_v53  ;;  %1318 = vset.pattern.permute.xlu0 %v1432_v2 }
 0x470   :  { %v914_v61 = vsub.f32 2.0, %v913_v60 }
 0x472   :  { %v915_v62 = vmul.f32 %v1337_v59, %v914_v61 }
 0x474   :  { %v919_v0 = vrot.slane %v915_v62, %v918_v63 }
 0x476   :  { %v920_v1 = vmul.f32 %v919_v0, %v910_v53 }
 0x478   :  { %924 = vperm.xlu1 %1317, %v920_v1  }
 0x4e9   :  { %v899_v3 = vpop.permute.xlu0 %898 }
 0x4ea   :  { %v906_v4 = vmul.f32 %v904_v49, %v899_v3 }
 0x4ec   :  { %v908_v5 = vsub.f32 %v880_v57, %v906_v4 }
 0x4ee   :  { %v911_v7 = vsel %vm909_vm7, %v899_v3, %v908_v5 }
 0x4ef   :  { %v921_v8 = vmul.f32 %v919_v0, %v911_v7 }
 0x4f1   :  { %929 = vperm.xlu1 %1317, %v921_v8   ;;  %v1181_v8 = vstv %s1179_s13 }
 0x4f5   :  { %1319 = vset.pattern.permute.xlu1 %v1432_v2 }
 0x4f7   :  { %v925_v10 = vpop.permute.xlu1 %924 }
 0x4f8   :  { %v936_v11 = vmul.f32 %v935_v9, %v925_v10 }
 0x4fa   :  { %v938_v12 = vsub.f32 %v910_v53, %v936_v11 }
 0x4fc   :  { %v941_v13 = vsel %vm940_vm8, %v925_v10, %v938_v12  ;;  %v1183_v10 = vstv %s1216_s30 }
 0x4fd   :  { %1338 = vrcp.f32 %v941_v13  ;;  %v966_v27 = vrot.slane %v941_v13, %v949_v18 }
 0x507   :  { %v1339_v14 = vpop.eup %1338 }
 0x508   :  { %v944_v15 = vmul.f32 %v1339_v14, %v941_v13 }
 0x50a   :  { %v945_v16 = vsub.f32 2.0, %v944_v15 }
 0x50c   :  { %v946_v17 = vmul.f32 %v1339_v14, %v945_v16 }
 0x50e   :  { %v950_v19 = vrot.slane %v946_v17, %v949_v18 }
 0x510   :  { %v951_v20 = vmul.f32 %v950_v19, %v941_v13 }
 0x512   :  { %955 = vperm.xlu0 %1318, %v951_v20  }
 0x516   :  { %1321 = vset.pattern.permute.xlu0 %v1433_v21 }
 0x570   :  { %v930_v22 = vpop.permute.xlu1 %929 }
 0x571   :  { %v937_v23 = vmul.f32 %v935_v9, %v930_v22 }
 0x573   :  { %v939_v24 = vsub.f32 %v911_v7, %v937_v23 }
 0x575   :  { %v942_v25 = vsel %vm940_vm8, %v930_v22, %v939_v24 }
 0x576   :  { %v952_v26 = vmul.f32 %v950_v19, %v942_v25 }
 0x578   :  { %960 = vperm.xlu1 %1319, %v952_v26  }
 0x57c   :  { %1320 = vset.pattern.permute.xlu1 %v1433_v21 }
 0x591   :  { %v956_v28 = vpop.permute.xlu0 %955 }
 0x592   :  { %v967_v29 = vmul.f32 %v966_v27, %v956_v28 }
 0x594   :  { %v969_v30 = vsub.f32 %v941_v13, %v967_v29 }
 0x596   :  { %v972_v31 = vsel %vm971_vm9, %v956_v28, %v969_v30 }
 0x597   :  { %1340 = vrcp.f32 %v972_v31  ;;  %v997_v48 = vrot.slane %v972_v31, %v980_v36 }
 0x5a1   :  { %v1341_v32 = vpop.eup %1340 }
 0x5a2   :  { %v975_v33 = vmul.f32 %v1341_v32, %v972_v31 }
 0x5a4   :  { %v976_v34 = vsub.f32 2.0, %v975_v33 }
 0x5a6   :  { %v977_v35 = vmul.f32 %v1341_v32, %v976_v34 }
 0x5a8   :  { %v981_v37 = vrot.slane %v977_v35, %v980_v36 }
 0x5aa   :  { %v982_v40 = vmul.f32 %v981_v37, %v972_v31 }
 0x5ac   :  { %986 = vperm.xlu1 %1320, %v982_v40  }
 0x5b0   :  { %1322 = vset.pattern.permute.xlu1 %v1434_v46 }
 0x5f7   :  { %v961_v41 = vpop.permute.xlu1 %960 }
 0x5f8   :  { %v968_v42 = vmul.f32 %v966_v27, %v961_v41 }
 0x5fa   :  { %v970_v43 = vsub.f32 %v942_v25, %v968_v42 }
 0x5fc   :  { %v973_v44 = vsel %vm971_vm9, %v961_v41, %v970_v43 }
 0x5fd   :  { %v983_v45 = vmul.f32 %v981_v37, %v973_v44 }
 0x5ff   :  { %991 = vperm.xlu0 %1321, %v983_v45  }
 0x603   :  { %1323 = vset.pattern.permute.xlu0 %v1434_v46 }
 0x62b   :  { %v987_v47 = vpop.permute.xlu1 %986 }
 0x62c   :  { %v998_v49 = vmul.f32 %v997_v48, %v987_v47 }
 0x62e   :  { %v1000_v50 = vsub.f32 %v972_v31, %v998_v49 }
 0x630   :  { %v1003_v51 = vsel %vm1002_vm10, %v987_v47, %v1000_v50 }
 0x631   :  { %1342 = vrcp.f32 %v1003_v51  ;;  %v1019_v61 = vrot.slane %v1003_v51, 7 }
 0x63b   :  { %v1343_v6 = vpop.eup %1342 }
 0x63c   :  { %v1006_v52 = vmul.f32 %v1343_v6, %v1003_v51 }
 0x63e   :  { %v1007_v53 = vsub.f32 2.0, %v1006_v52 }
 0x640   :  { %v1008_v55 = vmul.f32 %v1343_v6, %v1007_v53 }
 0x642   :  { %v1010_v58 = vrot.slane %v1008_v55, 7 }
 0x67e   :  { %v992_v54 = vpop.permute.xlu0 %991 }
 0x67f   :  { %v999_v56 = vmul.f32 %v997_v48, %v992_v54 }
 0x681   :  { %v1001_v57 = vsub.f32 %v973_v44, %v999_v56 }
 0x683   :  { %v1004_v59 = vsel %vm1002_vm10, %v992_v54, %v1001_v57 }
 0x684   :  { %v1012_v60 = vmul.f32 %v1010_v58, %v1004_v59 }
 0x686   :  { %1015 = vperm.xlu1 %1322, %v1012_v60  }
 0x705   :  { %v1016_v62 = vpop.permute.xlu1 %1015 }
 0x706   :  { %v1021_v63 = vmul.f32 %v1019_v61, %v1016_v62 }
 0x708   :  { %v1022_v0 = vsub.f32 %v1004_v59, %v1021_v63 }
 0x70a   :  { %v1024_v1 = vsel %vm1023_vm11, %v1016_v62, %v1022_v0 }
 0x70b   :  { %1287 = vmatmul.mubr.msk.f32.vlgmr.msra.gmra.mrb[8].mxu1 %vm101_vm0, %v1024_v1  ;;  %v1026_v2 = vsel %vm1025_vm12, %v1024_v1, 0.0 }
 0x70c   :  { %1027 = vadd.xlane.f32.xlu1 %v1026_v2 }
 0x799   :  { %v1028_v5 = vpop.xlane.xlu1 %1027 }
 0x7de   :  { %v1098_v3 = vpop.f32.mrb[8].mxu1 }
 0x7df   :  { %v1288_v4 = vpop.f32.mrb[9].mxu1  ;;  %1292 = vmatmul.mubr.msk.f32.vlgmr.msra.gmra.mrb[10].mxu0 %vm698_vm2, %v1098_v3 }
 0x8b2   :  { %v1174_v7 = vpop.f32.mrb[10].mxu0 }
 0x8b3   :  { %v1175_v9 = vadd.f32 %v1174_v7, %v1028_v5  ;;  %v1293_v39 = vpop.f32.mrb[11].mxu0 }
 0x8b5   :  { %v1182_v11 = vmul.f32 %v1181_v8, %v1175_v9  ;;  %1187 = vst.msk [vmem:[%s1679_s12 + $0x1] sm:$0x1] %vm1025_vm12, %v1175_v9 }
 0x8b7   :  { %v1184_v12 = vadd.f32 %v1183_v10, %v1182_v11 }
 0x8b9   :  { %v1185_v13 = vadd.f32 %v1184_v12, %v1606_v38 }
 0x8bb   :  { %1186 = vst.msk [vmem:[%s1679_s12] sm:$0x1] %vm1025_vm12, %v1185_v13 }
 0x8bc   :  { %1192 = vsyncpa [#allocation5], 1 }
 0x8bd   :  { %1193 = vsyncpa [#allocation8], 1 }
 0x8be   :  { %1194 = vsyncpa [#allocation6], 1 }
 0x8bf   :  { %1195 = vsyncpa [#allocation11], 1 }

</bundles_post_ra>
